<compile_context>
chip_gen: v7x
topology: tpu7x:2x2x1
jax: 0.10.0
libtpu: 0.0.40
codegen_flags: <defaults>
</compile_context>

<pallas_src>
import functools

import jax
import jax.numpy as jnp
from jax.experimental import pallas as pl
from jax.experimental.pallas import tpu as pltpu


def ppo_kernel(x_ref, w1_ref, b1_ref, w2_ref, b2_ref, wh_ref, bh_ref,
               out_ref, *, action_size):
    # shared_layers: Linear -> ReLU -> Linear -> ReLU
    # (bf16 MXU operands, f32 accumulation, f32 elementwise)
    x = x_ref[...].astype(jnp.bfloat16)
    h1 = jnp.dot(x, w1_ref[...], preferred_element_type=jnp.float32) + b1_ref[...]
    h1 = jnp.maximum(h1, 0.0)
    h2 = jnp.dot(h1.astype(jnp.bfloat16), w2_ref[...],
                 preferred_element_type=jnp.float32) + b2_ref[...]
    h2 = jnp.maximum(h2, 0.0)

    # fused policy+value head: one lane-dense matmul covering both heads
    head = jnp.dot(h2.astype(jnp.bfloat16), wh_ref[...],
                   preferred_element_type=jnp.float32) + bh_ref[...]

    lane = jax.lax.broadcasted_iota(jnp.int32, head.shape, 1)
    policy_mask = lane < action_size
    value_mask = lane == action_size

    # numerically-stable softmax restricted to the policy lanes
    masked = jnp.where(policy_mask, head, jnp.float32(-1e30))
    m = jnp.max(masked, axis=-1, keepdims=True)
    e = jnp.where(policy_mask, jnp.exp(masked - m), 0.0)
    denom = jnp.sum(e, axis=-1, keepdims=True)
    probs = e * pl.reciprocal(denom, approx=False)

    # padded output slab: [probs_0..A-1 | value | zeros]
    out_ref[...] = jnp.where(policy_mask, probs,
                             jnp.where(value_mask, head, 0.0))


def ppo_forward(x, params, *, tile_b=128):
    B, S = x.shape
    A = params["action_size"]
    H1 = params["w1"].shape[1]
    H2 = params["w2"].shape[1]
    HEAD = params["wh"].shape[1]

    B_pad = pl.cdiv(B, tile_b) * tile_b
    if B_pad != B:
        x = jnp.pad(x, ((0, B_pad - B), (0, 0)))

    # cast matmul operands to bf16 once, outside the kernel
    w1 = params["w1"].astype(jnp.bfloat16)
    w2 = params["w2"].astype(jnp.bfloat16)
    wh = params["wh"].astype(jnp.bfloat16)

    out = pl.pallas_call(
        functools.partial(ppo_kernel, action_size=A),
        out_shape=jax.ShapeDtypeStruct((B_pad, HEAD), jnp.float32),
        grid_spec=pltpu.PrefetchScalarGridSpec(
            num_scalar_prefetch=0,
            grid=(B_pad // tile_b,),
            in_specs=[
                pl.BlockSpec((tile_b, S), lambda i: (i, 0)),   # x tile
                pl.BlockSpec((S, H1), lambda i: (0, 0)),       # w1 (resident)
                pl.BlockSpec((1, H1), lambda i: (0, 0)),       # b1
                pl.BlockSpec((H1, H2), lambda i: (0, 0)),      # w2 (resident)
                pl.BlockSpec((1, H2), lambda i: (0, 0)),       # b2
                pl.BlockSpec((H2, HEAD), lambda i: (0, 0)),    # fused head W
                pl.BlockSpec((1, HEAD), lambda i: (0, 0)),     # fused head b
            ],
            out_specs=pl.BlockSpec((tile_b, HEAD), lambda i: (i, 0)),
        ),
        compiler_params=pltpu.CompilerParams(
            dimension_semantics=("parallel",)),
    )(x, w1, params["b1"], w2, params["b2"], wh, params["bh"])

    policy = out[:B, :A]
    value = out[:B, A:A + 1]
    return policy, value


def init_params(key, state_size, action_size, hidden_layers=(128, 128)):
    """PyTorch-Linear-style init: U(-1/sqrt(fan_in), 1/sqrt(fan_in))."""
    dims = [state_size, *hidden_layers]
    keys = jax.random.split(key, 8)

    def lin(kw, kb, fan_in, fan_out):
        bound = 1.0 / jnp.sqrt(jnp.float32(fan_in))
        w = jax.random.uniform(kw, (fan_in, fan_out), jnp.float32, -bound, bound)
        b = jax.random.uniform(kb, (1, fan_out), jnp.float32, -bound, bound)
        return w, b

    w1, b1 = lin(keys[0], keys[1], dims[0], dims[1])
    w2, b2 = lin(keys[2], keys[3], dims[1], dims[2])
    wp, bp = lin(keys[4], keys[5], dims[2], action_size)
    wv, bv = lin(keys[6], keys[7], dims[2], 1)

    # fuse policy (A cols) + value (1 col) heads, zero-pad to a 128 multiple
    HEAD = pl.cdiv(action_size + 1, 128) * 128
    wh = jnp.zeros((dims[2], HEAD), jnp.float32)
    wh = wh.at[:, :action_size].set(wp)
    wh = wh.at[:, action_size:action_size + 1].set(wv)
    bh = jnp.zeros((1, HEAD), jnp.float32)
    bh = bh.at[:, :action_size].set(bp)
    bh = bh.at[:, action_size:action_size + 1].set(bv)

    return {"w1": w1, "b1": b1, "w2": w2, "b2": b2,
            "wh": wh, "bh": bh,
            "wp": wp, "bp": bp, "wv": wv, "bv": bv,
            "action_size": action_size}


def ppo_reference(x, params):
    h1 = jnp.maximum(x @ params["w1"] + params["b1"], 0.0)
    h2 = jnp.maximum(h1 @ params["w2"] + params["b2"], 0.0)
    logits = h2 @ params["wp"] + params["bp"]
    policy = jax.nn.softmax(logits, axis=-1)
    value = h2 @ params["wv"] + params["bv"]
    return policy, value


if __name__ == "__main__":
    batch = 256           # >= 128 rows: fills MXU rows, amortizes launch overhead
    state_size = 32
    action_size = 8
    hidden_layers = (128, 128)

    key = jax.random.PRNGKey(0)
    kx, kp = jax.random.split(key)
    x = jax.random.normal(kx, (batch, state_size), jnp.float32)
    params = init_params(kp, state_size, action_size, hidden_layers)

    policy, value = ppo_forward(x, params)
    jax.block_until_ready((policy, value))

    # sanity check against a pure-JAX f32 reference.
    # bf16 matmul operands -> deliberately loosened tolerance (was 1e-5).
    ref_policy, ref_value = ppo_reference(x, params)
    assert policy.shape == (batch, action_size)
    assert value.shape == (batch, 1)
    assert jnp.allclose(policy, ref_policy, atol=2e-2, rtol=2e-2)
    assert jnp.allclose(value, ref_value, atol=2e-2, rtol=2e-2)
    assert jnp.allclose(jnp.sum(policy, axis=-1), 1.0, atol=1e-3)

    print("KERNEL_OK")
</pallas_src>

<mosaic_0001>
module attributes {stable_mosaic.version = 11 : i64} {
  func.func @ppo_kernel(%arg0: i32, %arg1: memref<128x32xf32, #tpu.memory_space<vmem>>, %arg2: memref<32x128xbf16, #tpu.memory_space<vmem>>, %arg3: memref<1x128xf32, #tpu.memory_space<vmem>>, %arg4: memref<128x128xbf16, #tpu.memory_space<vmem>>, %arg5: memref<1x128xf32, #tpu.memory_space<vmem>>, %arg6: memref<128x128xbf16, #tpu.memory_space<vmem>>, %arg7: memref<1x128xf32, #tpu.memory_space<vmem>>, %arg8: memref<128x128xf32, #tpu.memory_space<vmem>>) attributes {dimension_semantics = [#tpu.dimension_semantics<parallel>], iteration_bounds = array<i64: 2>, scalar_prefetch = 0 : i64, scratch_operands = 0 : i64, tpu.core_type = #tpu.core_type<tc>, window_params = [{transform_indices = @transform_0, window_bounds = array<i64: 128, 32>}, {pipeline_mode = #tpu.pipeline_mode<synchronous>, transform_indices = @transform_1, window_bounds = array<i64: 32, 128>}, {pipeline_mode = #tpu.pipeline_mode<synchronous>, transform_indices = @transform_2, window_bounds = array<i64: 1, 128>}, {pipeline_mode = #tpu.pipeline_mode<synchronous>, transform_indices = @transform_3, window_bounds = array<i64: 128, 128>}, {pipeline_mode = #tpu.pipeline_mode<synchronous>, transform_indices = @transform_4, window_bounds = array<i64: 1, 128>}, {pipeline_mode = #tpu.pipeline_mode<synchronous>, transform_indices = @transform_5, window_bounds = array<i64: 128, 128>}, {pipeline_mode = #tpu.pipeline_mode<synchronous>, transform_indices = @transform_6, window_bounds = array<i64: 1, 128>}, {transform_indices = @transform_7, window_bounds = array<i64: 128, 128>}]} {
    %c0 = arith.constant 0 : index
    %c0_0 = arith.constant 0 : index
    %0 = vector.load %arg1[%c0, %c0_0] : memref<128x32xf32, #tpu.memory_space<vmem>>, vector<128x32xf32>
    %1 = arith.truncf %0 : vector<128x32xf32> to vector<128x32xbf16>
    %c0_1 = arith.constant 0 : index
    %c0_2 = arith.constant 0 : index
    %2 = vector.load %arg2[%c0_1, %c0_2] : memref<32x128xbf16, #tpu.memory_space<vmem>>, vector<32x128xbf16>
    %cst = arith.constant dense<0.000000e+00> : vector<128x128xf32>
    %3 = tpu.matmul %1, %2, %cst {dimension_numbers = #tpu.dot_dimension_numbers<[1], [0], [0], [1], [0, 0, 1, 1], [], []>} : vector<128x32xbf16>, vector<32x128xbf16>, vector<128x128xf32> -> vector<128x128xf32>
    %c0_3 = arith.constant 0 : index
    %c0_4 = arith.constant 0 : index
    %4 = vector.load %arg3[%c0_3, %c0_4] : memref<1x128xf32, #tpu.memory_space<vmem>>, vector<1x128xf32>
    %5 = vector.broadcast %4 : vector<1x128xf32> to vector<128x128xf32>
    %6 = arith.addf %3, %5 : vector<128x128xf32>
    %cst_5 = arith.constant 0.000000e+00 : f32
    %7 = vector.broadcast %cst_5 : f32 to vector<128x128xf32>
    %8 = arith.maximumf %6, %7 : vector<128x128xf32>
    %9 = arith.truncf %8 : vector<128x128xf32> to vector<128x128xbf16>
    %c0_6 = arith.constant 0 : index
    %c0_7 = arith.constant 0 : index
    %10 = vector.load %arg4[%c0_6, %c0_7] : memref<128x128xbf16, #tpu.memory_space<vmem>>, vector<128x128xbf16>
    %cst_8 = arith.constant dense<0.000000e+00> : vector<128x128xf32>
    %11 = tpu.matmul %9, %10, %cst_8 {dimension_numbers = #tpu.dot_dimension_numbers<[1], [0], [0], [1], [0, 0, 1, 1], [], []>} : vector<128x128xbf16>, vector<128x128xbf16>, vector<128x128xf32> -> vector<128x128xf32>
    %c0_9 = arith.constant 0 : index
    %c0_10 = arith.constant 0 : index
    %12 = vector.load %arg5[%c0_9, %c0_10] : memref<1x128xf32, #tpu.memory_space<vmem>>, vector<1x128xf32>
    %13 = vector.broadcast %12 : vector<1x128xf32> to vector<128x128xf32>
    %14 = arith.addf %11, %13 : vector<128x128xf32>
    %cst_11 = arith.constant 0.000000e+00 : f32
    %15 = vector.broadcast %cst_11 : f32 to vector<128x128xf32>
    %16 = arith.maximumf %14, %15 : vector<128x128xf32>
    %17 = arith.truncf %16 : vector<128x128xf32> to vector<128x128xbf16>
    %c0_12 = arith.constant 0 : index
    %c0_13 = arith.constant 0 : index
    %18 = vector.load %arg6[%c0_12, %c0_13] : memref<128x128xbf16, #tpu.memory_space<vmem>>, vector<128x128xbf16>
    %cst_14 = arith.constant dense<0.000000e+00> : vector<128x128xf32>
    %19 = tpu.matmul %17, %18, %cst_14 {dimension_numbers = #tpu.dot_dimension_numbers<[1], [0], [0], [1], [0, 0, 1, 1], [], []>} : vector<128x128xbf16>, vector<128x128xbf16>, vector<128x128xf32> -> vector<128x128xf32>
    %c0_15 = arith.constant 0 : index
    %c0_16 = arith.constant 0 : index
    %20 = vector.load %arg7[%c0_15, %c0_16] : memref<1x128xf32, #tpu.memory_space<vmem>>, vector<1x128xf32>
    %21 = vector.broadcast %20 : vector<1x128xf32> to vector<128x128xf32>
    %22 = arith.addf %19, %21 : vector<128x128xf32>
    %23 = tpu.iota {dimensions = array<i32: 1>} : vector<128x128xi32>
    %c8_i32 = arith.constant 8 : i32
    %24 = vector.broadcast %c8_i32 : i32 to vector<128x128xi32>
    %25 = arith.cmpi slt, %23, %24 : vector<128x128xi32>
    %c8_i32_17 = arith.constant 8 : i32
    %26 = vector.broadcast %c8_i32_17 : i32 to vector<128x128xi32>
    %27 = arith.cmpi eq, %23, %26 : vector<128x128xi32>
    %cst_18 = arith.constant -1.000000e+30 : f32
    %28 = vector.broadcast %cst_18 : f32 to vector<128x128xf32>
    %29 = arith.select %25, %22, %28 : vector<128x128xi1>, vector<128x128xf32>
    %cst_19 = arith.constant dense<0xFF800000> : vector<128xf32>
    %30 = vector.multi_reduction <maximumf>, %29, %cst_19 [1] : vector<128x128xf32> to vector<128xf32>
    %31 = vector.shape_cast %30 : vector<128xf32> to vector<128x1xf32>
    %32 = vector.broadcast %31 : vector<128x1xf32> to vector<128x128xf32>
    %33 = arith.subf %29, %32 : vector<128x128xf32>
    %34 = math.exp %33 : vector<128x128xf32>
    %cst_20 = arith.constant 0.000000e+00 : f32
    %35 = vector.broadcast %cst_20 : f32 to vector<128x128xf32>
    %36 = arith.select %25, %34, %35 : vector<128x128xi1>, vector<128x128xf32>
    %cst_21 = arith.constant dense<0.000000e+00> : vector<128xf32>
    %37 = vector.multi_reduction <add>, %36, %cst_21 [1] : vector<128x128xf32> to vector<128xf32>
    %38 = vector.shape_cast %37 : vector<128xf32> to vector<128x1xf32>
    %39 = tpu.reciprocal %38 : vector<128x1xf32> -> vector<128x1xf32>
    %40 = vector.broadcast %39 : vector<128x1xf32> to vector<128x128xf32>
    %41 = arith.mulf %36, %40 : vector<128x128xf32>
    %cst_22 = arith.constant 0.000000e+00 : f32
    %42 = vector.broadcast %cst_22 : f32 to vector<128x128xf32>
    %43 = arith.select %27, %22, %42 : vector<128x128xi1>, vector<128x128xf32>
    %44 = arith.select %25, %41, %43 : vector<128x128xi1>, vector<128x128xf32>
    %c0_23 = arith.constant 0 : index
    %c0_24 = arith.constant 0 : index
    %45 = vector.load %arg8[%c0_23, %c0_24] : memref<128x128xf32, #tpu.memory_space<vmem>>, vector<128x128xf32>
    tpu.vector_store %arg8[%c0_23, %c0_24], %44 {strides = array<i32>} : memref<128x128xf32, #tpu.memory_space<vmem>>, vector<128x128xf32>,
    return
  }
  func.func @transform_0(%arg0: i32) -> (i32, i32) {
    %c0_i32 = arith.constant 0 : i32
    %c0_i32_0 = arith.constant 0 : i32
    return %arg0, %c0_i32 : i32, i32
  }
  func.func @transform_1(%arg0: i32) -> (i32, i32) {
    %c0_i32 = arith.constant 0 : i32
    %c0_i32_0 = arith.constant 0 : i32
    %c0_i32_1 = arith.constant 0 : i32
    return %c0_i32, %c0_i32_0 : i32, i32
  }
  func.func @transform_2(%arg0: i32) -> (i32, i32) {
    %c0_i32 = arith.constant 0 : i32
    %c0_i32_0 = arith.constant 0 : i32
    %c0_i32_1 = arith.constant 0 : i32
    return %c0_i32, %c0_i32_0 : i32, i32
  }
  func.func @transform_3(%arg0: i32) -> (i32, i32) {
    %c0_i32 = arith.constant 0 : i32
    %c0_i32_0 = arith.constant 0 : i32
    %c0_i32_1 = arith.constant 0 : i32
    return %c0_i32, %c0_i32_0 : i32, i32
  }
  func.func @transform_4(%arg0: i32) -> (i32, i32) {
    %c0_i32 = arith.constant 0 : i32
    %c0_i32_0 = arith.constant 0 : i32
    %c0_i32_1 = arith.constant 0 : i32
    return %c0_i32, %c0_i32_0 : i32, i32
  }
  func.func @transform_5(%arg0: i32) -> (i32, i32) {
    %c0_i32 = arith.constant 0 : i32
    %c0_i32_0 = arith.constant 0 : i32
    %c0_i32_1 = arith.constant 0 : i32
    return %c0_i32, %c0_i32_0 : i32, i32
  }
  func.func @transform_6(%arg0: i32) -> (i32, i32) {
    %c0_i32 = arith.constant 0 : i32
    %c0_i32_0 = arith.constant 0 : i32
    %c0_i32_1 = arith.constant 0 : i32
    return %c0_i32, %c0_i32_0 : i32, i32
  }
  func.func @transform_7(%arg0: i32) -> (i32, i32) {
    %c0_i32 = arith.constant 0 : i32
    %c0_i32_0 = arith.constant 0 : i32
    return %arg0, %c0_i32 : i32, i32
  }
}

</mosaic_0001>

<bundles_post_ra>
// kernel: tpu_custom_call.1
= control target key start
LH: loop header
LB: loop body
LE: loop exit
PB: predicated region body
PF: predicated region fallthrough
CT: control target
= control target key end

     0   :  { %12 = vsyncpa [#allocation3], 0  ;;  %s2076_s0 = inlined_call_operand.vmem [shape: f32[256,32], index: 0, kind: input, shape index: {}]   ;;  %s2077_s1 = inlined_call_operand.vmem [shape: bf16[32,128], index: 1, kind: input, shape index: {}]   ;;  %s2078_s2 = inlined_call_operand.vmem [shape: f32[1,128], index: 2, kind: input, shape index: {}]   ;;  %s2079_s3 = inlined_call_operand.vmem [shape: bf16[128,128], index: 3, kind: input, shape index: {}]   ;;  %s2080_s4 = inlined_call_operand.vmem [shape: f32[1,128], index: 4, kind: input, shape index: {}]   ;;  %s2081_s5 = inlined_call_operand.vmem [shape: bf16[128,128], index: 5, kind: input, shape index: {}]   ;;  %s2082_s6 = inlined_call_operand.vmem [shape: f32[1,128], index: 6, kind: input, shape index: {}]   ;;  %s2083_s7 = inlined_call_operand.hbm [shape: f32[256,128], index: 7, kind: output, shape index: {}]  }
   0x1   :  { %14 = vsyncpa [#allocation3 + $0x1], 0  ;;  %s1536_s24 = smov 0   ;;  %s1538_s25 = smov 0  }
   0x2   :  { %s1540_s26 = smov 0   ;;  %s1542_s27 = smov 0  }
   0x3 LB: > { %s1557_s28 = sadd.s32 4294967295, %s1491_s27   ;;  %s1138_s29 = sadd.s32 4294967294, %s1491_s27   ;;  %s1491_s27 = sphi %s1542_s27, %s2089_s27   ;;  %s1487_s26 = sphi %s1540_s26, %s2088_s26   ;;  %s1483_s25 = sphi %s1538_s25, %s2087_s25   ;;  %s1479_s24 = sphi %s1536_s24, %s2086_s24  }
   0x4   : > { %s1561_s30 = sadd.s32 1, %s1491_s27   ;;  %s179_s8 = sadd.s32 1, %s1487_s26 }
   0x5   : > { %s176_s9 = ssub.s32 %s1491_s27, %s1561_s30  ;;  %p189_p0 = scmp.ne.s32.totalorder %s1487_s26, %s1483_s25 }
   0x6   : > { %p177_p1 = scmp.eq.s32.totalorder %s176_s9, 0  ;;  %p190_p2 = scmp.eq.s32.totalorder %s1557_s28, 1 }
   0x7   : > { %p195_p3 = scmp.ne.s32.totalorder %s1483_s25, %s1479_s24  ;;  %p196_p4 = scmp.eq.s32.totalorder %s1138_s29, 1 }
   0x8   : > { %s1572_s10 = scalar_select %p177_p1, %s1487_s26, %s179_s8  }
   0x9   : > { %p1574_p5 = por %p190_p2, %p189_p0  ;;  %p1578_p6 = por %p196_p4, %p195_p3 }
   0xa   : > { %p1141_p7 = scmp.ge.s32.totalorder %s1491_s27, 1  ;;  %p241_p8 = scmp.lt.s32.totalorder %s1491_s27, 3 }
   0xc   : > { %p242_p9 = pnand %p1141_p7, %p241_p8 }
   0xd   : > { %v1347_v0 = vld [vmem:[%s2077_s1] sm:$0xff] (!%p242_p9)   ;;  %s1143_s15 = sshll.u32 (!%p242_p9), %s1557_s28, 4  ;;  %v1348_v1 = vld [vmem:[%s2077_s1 + $0x8] sm:$0xff] (!%p242_p9)   ;;  %v1351_v4 = vld [vmem:[%s2079_s3 + $0x10] sm:$0xff] (!%p242_p9)   ;;  %vm328_vm0 = vcmask (!%p242_p9), 261120   ;;  %s270_s18 = sand.u32 (!%p242_p9), 1, %s1483_s25  }
   0xe   : > { %245 = sbr.rel (%p242_p9) target bundleno = 1048 (0x418), region = 48  ;;  %p274_p10 = scmp.lt.s32.totalorder (!%p242_p9), %s1143_s15, 31  ;;  %1222 = vmatprep.subr.bf16.mxu0 (!%p242_p9), %v1347_v0  ;;  %v1349_v2 = vld [vmem:[%s2079_s3] sm:$0xff] (!%p242_p9)   ;;  %v1350_v3 = vld [vmem:[%s2079_s3 + $0x8] sm:$0xff] (!%p242_p9)   ;;  %v1352_v14 = vld [vmem:[%s2079_s3 + $0x18] sm:$0xff] (!%p242_p9)  }
   0xf   : > { %1223 = vmatpush3.bf16.msra.mxu0 (!%p242_p9), %v1347_v0  ;;  %1242 = vmatprep.subr.bf16.mxu1 (!%p242_p9), %v1349_v2  ;;  %v1353_v18 = vld [vmem:[%s2079_s3 + $0x20] sm:$0xff] (!%p242_p9)   ;;  %v1354_v22 = vld [vmem:[%s2079_s3 + $0x28] sm:$0xff] (!%p242_p9)   ;;  %v1355_v32 = vld [vmem:[%s2079_s3 + $0x30] sm:$0xff] (!%p242_p9)   ;;  %s1142_s19 = sshll.u32 (!%p242_p9), %s270_s18, 7  ;;  %s1179_s21 = sshll.u32 (!%p242_p9), %s1557_s28, 11 }
  0x10   : > { %1224 = vmatprep.subr.bf16.mxu0 (!%p242_p9), %v1348_v1  ;;  %1243 = vmatpush3.bf16.msra.mxu1 (!%p242_p9), %v1349_v2  ;;  %v1356_v33 = vld [vmem:[%s2079_s3 + $0x38] sm:$0xff] (!%p242_p9)   ;;  %v1357_v34 = vld [vmem:[%s2081_s5] sm:$0xff] (!%p242_p9)   ;;  %v1358_v35 = vld [vmem:[%s2081_s5 + $0x8] sm:$0xff] (!%p242_p9)   ;;  %s1946_s20 = scalar_lea.vmem (!%p242_p9), [#allocation2], %s1142_s19  ;;  %s2025_s9 = scalar_lea.hbm (!%p242_p9), %s2083_s7, %s1179_s21 }
  0x11   : > { %1244 = vmatprep.subr.bf16.mxu1 (!%p242_p9), %v1350_v3  ;;  %v1359_v36 = vld [vmem:[%s2081_s5 + $0x10] sm:$0xff] (!%p242_p9)   ;;  %v1360_v37 = vld [vmem:[%s2081_s5 + $0x18] sm:$0xff] (!%p242_p9)   ;;  %v1361_v38 = vld [vmem:[%s2081_s5 + $0x20] sm:$0xff] (!%p242_p9)   ;;  %s2035_s28 = scalar_lea.sflag (!%p242_p9), [#allocation3], %s270_s18  ;;  %s1493_s13 = smov (!%p242_p9), [#allocation2]  }
  0x12   : > { %v1362_v39 = vld [vmem:[%s2081_s5 + $0x28] sm:$0xff] (!%p242_p9)   ;;  %v1145_v40 = vld [vmem:[%s2078_s2] ss:$0 sm:$0xff] (!%p242_p9)  ;;  %s1433_s14 = sshll.u32 (!%p242_p9), %s1493_s13, 4  ;;  %s1434_s14 = int_to_ptr.vmem [resolvable:$false] %s1433_s14 }
  0x13   : > { %1225 = vmatpush3.bf16.msra.mxu0 (!%p242_p9), %v1348_v1 }
  0x14   : > { %1245 = vmatpush3.bf16.msra.mxu1 (!%p242_p9), %v1350_v3  ;;  %1274 = vmatprep.subr.bf16.mxu0 (!%p242_p9), %v1357_v34 }
  0x15   : > { %s2091_s15 = smov (!%p274_p10, %s1143_s15), 31  ;;  %1246 = vmatprep.subr.bf16.mxu1 %v1351_v4 }
  0x16   : > { %s1144_s22 = sshll.u32 %s2091_s15, 3  ;;  %s1435_s15 = scalar_lea.vmem %s1434_s14, 4096 }
  0x17   : > { %s1600_s8 = scalar_lea.vmem %s2076_s0, %s1144_s22  ;;  %s1076_s22 = sshll.u32 %s1946_s20, 4  ;;  %s2027_s22 = int_to_ptr.vmem [resolvable:$true] %s1076_s22 }
  0x18   : > { %v281_v5 = vld [vmem:[%s1600_s8] sm:$0xff]  ;;  %v282_v6 = vld [vmem:[%s1600_s8 + $0x8] sm:$0xff]  ;;  %v283_v7 = vld [vmem:[%s1600_s8 + $0x10] sm:$0xff]  ;;  %1247 = vmatpush3.bf16.msra.mxu1 %v1351_v4  ;;  %p1436_p0 = scmp.lt.s32.totalorder %s2027_s22, %s1434_s14 }
  0x19   : > { %v297_v8 = vpack.c.bf16 %v282_v6, %v281_v5  ;;  %v284_v9 = vld [vmem:[%s1600_s8 + $0x18] sm:$0xff]  ;;  %v285_v10 = vld [vmem:[%s1600_s8 + $0x20] sm:$0xff]  ;;  %v286_v11 = vld [vmem:[%s1600_s8 + $0x28] sm:$0xff]  ;;  %1248 = vmatprep.subr.bf16.mxu1 %v1352_v14 }
  0x1a   : > { %v298_v12 = vpack.c.bf16 %v284_v9, %v283_v7  ;;  %v299_v13 = vpack.c.bf16 %v286_v11, %v285_v10  ;;  %v287_v15 = vld [vmem:[%s1600_s8 + $0x30] sm:$0xff]  ;;  %v288_v16 = vld [vmem:[%s1600_s8 + $0x38] sm:$0xff]  ;;  %v289_v17 = vld [vmem:[%s1600_s8 + $0x40] sm:$0xff] }
  0x1b   : > { %1226 = vmatprep.mubr.msk.bf16.mxu0 %vm328_vm0, %v297_v8  ;;  %v290_v19 = vld [vmem:[%s1600_s8 + $0x48] sm:$0xff]  ;;  %v300_v20 = vpack.c.bf16 %v288_v16, %v287_v15  ;;  %v291_v23 = vld [vmem:[%s1600_s8 + $0x50] sm:$0xff]  ;;  %v292_v24 = vld [vmem:[%s1600_s8 + $0x58] sm:$0xff] }
  0x1c   : > { %1227 = vmatmul.mubr.msk.bf16.vlgmr.msra.gmra.mrb[0].mxu0 %vm328_vm0, %v298_v12  ;;  %v301_v21 = vpack.c.bf16 %v290_v19, %v289_v17  ;;  %1249 = vmatpush3.bf16.msra.mxu1 %v1352_v14  ;;  %v293_v25 = vld [vmem:[%s1600_s8 + $0x60] sm:$0xff]  ;;  %v294_v26 = vld [vmem:[%s1600_s8 + $0x68] sm:$0xff]  ;;  %v302_v27 = vpack.c.bf16 %v292_v24, %v291_v23  ;;  %v295_v29 = vld [vmem:[%s1600_s8 + $0x70] sm:$0xff] }
  0x1d   : > { %1230 = vmatprep.mubr.msk.bf16.mxu0 %vm328_vm0, %v299_v13  ;;  %1250 = vmatprep.subr.bf16.mxu1 %v1353_v18  ;;  %v303_v28 = vpack.c.bf16 %v294_v26, %v293_v25  ;;  %v296_v30 = vld [vmem:[%s1600_s8 + $0x78] sm:$0xff]  ;;  %s1429_s8 = scalar_lea.vmem %s2027_s22, 2048 }
  0x1e   : > { %v304_v31 = vpack.c.bf16 %v296_v30, %v295_v29  ;;  %1275 = vmatpush3.bf16.msra.mxu0 %v1357_v34  ;;  %v1364_v34 = vld [vmem:[%s2081_s5 + $0x38] sm:$0xff]   ;;  %p1430_p11 = scmp.ne.s32.totalorder %s2027_s22, %s1429_s8  ;;  %p1437_p1 = scmp.lt.s32.totalorder %s1435_s15, %s1429_s8 }
  0x1f   : > { %1276 = vmatprep.subr.bf16.mxu0 %v1358_v35 }
  0x20   : > { %1251 = vmatpush3.bf16.msra.mxu1 %v1353_v18  ;;  %p1431_p12 = pnand %p1430_p11, %p1574_p5  ;;  %p1438_p2 = por %p1437_p1, %p1436_p0 }
  0x21   : > { %1252 = vmatprep.subr.bf16.mxu1 %v1354_v22 }
  0x22   : > { %1277 = vmatpush3.bf16.msra.mxu0 %v1358_v35  ;;  %v1156_v35 = vld [vmem:[%s2080_s4] ss:$0 sm:$0xff]  ;;  %p1432_p13 = pneg %p1431_p12 }
  0x23   : > { %1278 = vmatprep.subr.bf16.mxu0 %v1359_v36 }
  0x24   : > { %1231 = vmatmul.mubr.msk.bf16.gmra.mrb[4].mxu0 %vm328_vm0, %v300_v20  ;;  %1253 = vmatpush3.bf16.msra.mxu1 %v1354_v22  ;;  %p1439_p3 = pnand %p1438_p2, %p1432_p13 }
  0x25   : > { %1234 = vmatprep.mubr.msk.bf16.mxu0 %vm328_vm0, %v301_v21  ;;  %1254 = vmatprep.subr.bf16.mxu1 %v1355_v32 }
  0x26   : > { %1279 = vmatpush3.bf16.msra.mxu0 %v1359_v36 }
  0x27   : > { %1280 = vmatprep.subr.bf16.mxu0 %v1360_v37 }
  0x28   : > { %1255 = vmatpush3.bf16.msra.mxu1 %v1355_v32 }
  0x29   : > { %1256 = vmatprep.subr.bf16.mxu1 %v1356_v33 }
  0x2a   : > { %1281 = vmatpush3.bf16.msra.mxu0 %v1360_v37 }
  0x2b   : > { %1282 = vmatprep.subr.bf16.mxu0 %v1361_v38 }
  0x2c   : > { %1235 = vmatmul.mubr.msk.bf16.gmra.mrb[8].mxu0 %vm328_vm0, %v302_v27  ;;  %1257 = vmatpush3.bf16.msra.mxu1 %v1356_v33  ;;  %v1363_v33 = vld [vmem:[%s2081_s5 + $0x30] sm:$0xff]  }
  0x2d   : > { %1238 = vmatprep.mubr.msk.bf16.mxu0 %vm328_vm0, %v303_v28 }
  0x2e   : > { %1283 = vmatpush3.bf16.msra.mxu0 %v1361_v38 }
  0x2f   : > { %1284 = vmatprep.subr.bf16.mxu0 %v1362_v39 }
  0x32   : > { %1285 = vmatpush3.bf16.msra.mxu0 %v1362_v39 }
  0x33   : > { %1286 = vmatprep.subr.bf16.mxu0 %v1363_v33 }
  0x34   : > { %1239 = vmatmul.mubr.msk.bf16.gmra.mrb[12].mxu0 %vm328_vm0, %v304_v31 }
  0x36   : > { %1287 = vmatpush3.bf16.msra.mxu0 %v1363_v33 }
  0x37   : > { %1288 = vmatprep.subr.bf16.mxu0 %v1364_v34 }
  0x3a   : > { %1289 = vmatpush3.bf16.msra.mxu0 %v1364_v34 }
  0xef   : > { %v1228_v41 = vpop.f32.mrb[0].mxu0 }
  0xf0   : > { %v396_v42 = vadd.f32 %v1228_v41, %v1145_v40  ;;  %v387_v43 = vpop.f32.mrb[1].mxu0 }
  0xf1   : > { %v388_v44 = vadd.f32 %v1145_v40, %v387_v43  ;;  %v1229_v45 = vpop.f32.mrb[2].mxu0 }
  0xf2   : > { %v399_v46 = vadd.f32 %v1229_v45, %v1145_v40  ;;  %v390_v47 = vpop.f32.mrb[3].mxu0  ;;  %v452_v49 = vmax.f32 %v396_v42, 0.0 }
  0xf3   : > { %v391_v48 = vadd.f32 %v1145_v40, %v390_v47  ;;  %v450_v51 = vmax.f32 %v388_v44, 0.0 }
  0xf4   : > { %v453_v50 = vmax.f32 %v399_v46, 0.0 }
  0xf5   : > { %v451_v52 = vmax.f32 %v391_v48, 0.0 }
  0xf6   : > { %v467_v53 = vpack.c.bf16 %v453_v50, %v452_v49 }
  0xf7   : > { %v1232_v54 = vpop.f32.mrb[4].mxu0  ;;  %v466_v55 = vpack.c.bf16 %v451_v52, %v450_v51 }
  0xf8   : > { %v412_v56 = vadd.f32 %v1232_v54, %v1145_v40  ;;  %v403_v57 = vpop.f32.mrb[5].mxu0 }
  0xf9   : > { %v404_v58 = vadd.f32 %v1145_v40, %v403_v57  ;;  %v1233_v59 = vpop.f32.mrb[6].mxu0  ;;  %1258 = vmatprep.mubr.bf16.mxu1 %v466_v55 }
  0xfa   : > { %v456_v60 = vmax.f32 %v412_v56, 0.0  ;;  %v415_v61 = vadd.f32 %v1233_v59, %v1145_v40  ;;  %v406_v62 = vpop.f32.mrb[7].mxu0  ;;  %1259 = vmatmul.mubr.bf16.vlgmr.msra.gmra.mrb[0].mxu1 %v467_v53 }
  0xfb   : > { %v407_v63 = vadd.f32 %v1145_v40, %v406_v62  ;;  %v454_v1 = vmax.f32 %v404_v58, 0.0 }
  0xfc   : > { %v457_v0 = vmax.f32 %v415_v61, 0.0 }
  0xfd   : > { %v455_v2 = vmax.f32 %v407_v63, 0.0 }
  0xfe   : > { %v469_v3 = vpack.c.bf16 %v457_v0, %v456_v60 }
  0xff   : > { %v468_v4 = vpack.c.bf16 %v455_v2, %v454_v1  ;;  %v1236_v5 = vpop.f32.mrb[8].mxu0 }
 0x100   : > { %v428_v6 = vadd.f32 %v1236_v5, %v1145_v40  ;;  %v419_v7 = vpop.f32.mrb[9].mxu0 }
 0x101   : > { %v420_v8 = vadd.f32 %v1145_v40, %v419_v7  ;;  %v1237_v9 = vpop.f32.mrb[10].mxu0  ;;  %1262 = vmatprep.mubr.bf16.mxu1 %v468_v4 }
 0x102   : > { %v460_v10 = vmax.f32 %v428_v6, 0.0  ;;  %v431_v11 = vadd.f32 %v1237_v9, %v1145_v40  ;;  %v422_v12 = vpop.f32.mrb[11].mxu0  ;;  %1263 = vmatmul.mubr.bf16.gmra.mrb[4].mxu1 %v469_v3 }
 0x103   : > { %v423_v13 = vadd.f32 %v1145_v40, %v422_v12  ;;  %v458_v15 = vmax.f32 %v420_v8, 0.0 }
 0x104   : > { %v461_v14 = vmax.f32 %v431_v11, 0.0 }
 0x105   : > { %v459_v16 = vmax.f32 %v423_v13, 0.0 }
 0x106   : > { %v471_v17 = vpack.c.bf16 %v461_v14, %v460_v10 }
 0x107   : > { %v470_v18 = vpack.c.bf16 %v459_v16, %v458_v15  ;;  %v1240_v19 = vpop.f32.mrb[12].mxu0 }
 0x108   : > { %v444_v20 = vadd.f32 %v1240_v19, %v1145_v40  ;;  %v435_v21 = vpop.f32.mrb[13].mxu0 }
 0x109   : > { %v436_v22 = vadd.f32 %v1145_v40, %v435_v21  ;;  %v1241_v23 = vpop.f32.mrb[14].mxu0  ;;  %1266 = vmatprep.mubr.bf16.mxu1 %v470_v18 }
 0x10a   : > { %v464_v24 = vmax.f32 %v444_v20, 0.0  ;;  %v447_v25 = vadd.f32 %v1241_v23, %v1145_v40  ;;  %v438_v26 = vpop.f32.mrb[15].mxu0  ;;  %1267 = vmatmul.mubr.bf16.gmra.mrb[8].mxu1 %v471_v17 }
 0x10b   : > { %v439_v27 = vadd.f32 %v1145_v40, %v438_v26  ;;  %v462_v29 = vmax.f32 %v436_v22, 0.0 }
 0x10c   : > { %v465_v28 = vmax.f32 %v447_v25, 0.0 }
 0x10d   : > { %v463_v30 = vmax.f32 %v439_v27, 0.0 }
 0x10e   : > { %v473_v31 = vpack.c.bf16 %v465_v28, %v464_v24  ;;  %v834_v28 = vlaneseq }
 0x10f   : > { %v472_v32 = vpack.c.bf16 %v463_v30, %v462_v29  ;;  %v1679_v30 = vld [vmem:[%s2082_s6] ss:$0 sm:$0xff] }
 0x110   : > { %v1674_v29 = vand.u32 127, %v834_v28 }
 0x111   : > { %1270 = vmatprep.mubr.bf16.mxu1 %v472_v32 }
 0x112   : > { %1271 = vmatmul.mubr.bf16.gmra.mrb[12].mxu1 %v473_v31  ;;  %vm836_vm1 = vcmp.lt.s32.totalorder %v1674_v29, 8  ;;  %vm837_vm2 = vcmp.eq.s32.totalorder %v1674_v29, 8 }
 0x1cd   : > { %v1260_v36 = vpop.f32.mrb[0].mxu1 }
 0x1ce   : > { %v588_v37 = vadd.f32 %v1260_v36, %v1156_v35  ;;  %v579_v38 = vpop.f32.mrb[1].mxu1 }
 0x1cf   : > { %v580_v39 = vadd.f32 %v1156_v35, %v579_v38  ;;  %v1261_v40 = vpop.f32.mrb[2].mxu1 }
 0x1d0   : > { %v591_v41 = vadd.f32 %v1261_v40, %v1156_v35  ;;  %v582_v42 = vpop.f32.mrb[3].mxu1  ;;  %v644_v44 = vmax.f32 %v588_v37, 0.0 }
 0x1d1   : > { %v583_v43 = vadd.f32 %v1156_v35, %v582_v42  ;;  %v642_v46 = vmax.f32 %v580_v39, 0.0 }
 0x1d2   : > { %v645_v45 = vmax.f32 %v591_v41, 0.0 }
 0x1d3   : > { %v643_v47 = vmax.f32 %v583_v43, 0.0 }
 0x1d4   : > { %v659_v48 = vpack.c.bf16 %v645_v45, %v644_v44 }
 0x1d5   : > { %v658_v49 = vpack.c.bf16 %v643_v47, %v642_v46  ;;  %v1264_v50 = vpop.f32.mrb[4].mxu1 }
 0x1d6   : > { %v604_v51 = vadd.f32 %v1264_v50, %v1156_v35  ;;  %v595_v52 = vpop.f32.mrb[5].mxu1 }
 0x1d7   : > { %v596_v53 = vadd.f32 %v1156_v35, %v595_v52  ;;  %v1265_v54 = vpop.f32.mrb[6].mxu1  ;;  %1290 = vmatprep.mubr.bf16.mxu0 %v658_v49 }
 0x1d8   : > { %v607_v55 = vadd.f32 %v1265_v54, %v1156_v35  ;;  %v598_v56 = vpop.f32.mrb[7].mxu1  ;;  %1291 = vmatmul.mubr.bf16.vlgmr.msra.gmra.mrb[16].mxu0 %v659_v48  ;;  %v648_v58 = vmax.f32 %v604_v51, 0.0 }
 0x1d9   : > { %v599_v57 = vadd.f32 %v1156_v35, %v598_v56  ;;  %v646_v60 = vmax.f32 %v596_v53, 0.0 }
 0x1da   : > { %v649_v59 = vmax.f32 %v607_v55, 0.0 }
 0x1db   : > { %v647_v61 = vmax.f32 %v599_v57, 0.0 }
 0x1dc   : > { %v661_v62 = vpack.c.bf16 %v649_v59, %v648_v58 }
 0x1dd   : > { %v660_v63 = vpack.c.bf16 %v647_v61, %v646_v60  ;;  %v1268_v0 = vpop.f32.mrb[8].mxu1 }
 0x1de   : > { %v620_v1 = vadd.f32 %v1268_v0, %v1156_v35  ;;  %v611_v2 = vpop.f32.mrb[9].mxu1 }
 0x1df   : > { %v612_v3 = vadd.f32 %v1156_v35, %v611_v2  ;;  %v1269_v4 = vpop.f32.mrb[10].mxu1  ;;  %1294 = vmatprep.mubr.bf16.mxu0 %v660_v63 }
 0x1e0   : > { %v623_v5 = vadd.f32 %v1269_v4, %v1156_v35  ;;  %v614_v6 = vpop.f32.mrb[11].mxu1  ;;  %1295 = vmatmul.mubr.bf16.gmra.mrb[20].mxu0 %v661_v62  ;;  %v652_v8 = vmax.f32 %v620_v1, 0.0 }
 0x1e1   : > { %v615_v7 = vadd.f32 %v1156_v35, %v614_v6  ;;  %v650_v10 = vmax.f32 %v612_v3, 0.0 }
 0x1e2   : > { %v653_v9 = vmax.f32 %v623_v5, 0.0 }
 0x1e3   : > { %v651_v11 = vmax.f32 %v615_v7, 0.0 }
 0x1e4   : > { %v663_v12 = vpack.c.bf16 %v653_v9, %v652_v8 }
 0x1e5   : > { %v662_v13 = vpack.c.bf16 %v651_v11, %v650_v10  ;;  %v1272_v14 = vpop.f32.mrb[12].mxu1 }
 0x1e6   : > { %v636_v15 = vadd.f32 %v1272_v14, %v1156_v35  ;;  %v627_v16 = vpop.f32.mrb[13].mxu1 }
 0x1e7   : > { %v628_v17 = vadd.f32 %v1156_v35, %v627_v16  ;;  %v1273_v18 = vpop.f32.mrb[14].mxu1  ;;  %1298 = vmatprep.mubr.bf16.mxu0 %v662_v13 }
 0x1e8   : > { %v639_v19 = vadd.f32 %v1273_v18, %v1156_v35  ;;  %v630_v20 = vpop.f32.mrb[15].mxu1  ;;  %1299 = vmatmul.mubr.bf16.gmra.mrb[24].mxu0 %v663_v12  ;;  %v656_v22 = vmax.f32 %v636_v15, 0.0 }
 0x1e9   : > { %v631_v21 = vadd.f32 %v1156_v35, %v630_v20  ;;  %v654_v24 = vmax.f32 %v628_v17, 0.0 }
 0x1ea   : > { %v657_v23 = vmax.f32 %v639_v19, 0.0 }
 0x1eb   : > { %v655_v25 = vmax.f32 %v631_v21, 0.0 }
 0x1ec   : > { %v665_v26 = vpack.c.bf16 %v657_v23, %v656_v22 }
 0x1ed   : > { %v664_v27 = vpack.c.bf16 %v655_v25, %v654_v24 }
 0x1ef   : > { %1302 = vmatprep.mubr.bf16.mxu0 %v664_v27 }
 0x1f0   : > { %1303 = vmatmul.mubr.bf16.gmra.mrb[28].mxu0 %v665_v26 }
 0x2ab   : > { %v1292_v31 = vpop.f32.mrb[16].mxu0 }
 0x2ac   : > { %v780_v32 = vadd.f32 %v1292_v31, %v1679_v30  ;;  %v771_v33 = vpop.f32.mrb[17].mxu0 }
 0x2ad   : > { %v772_v34 = vadd.f32 %v1679_v30, %v771_v33  ;;  %v1293_v35 = vpop.f32.mrb[18].mxu0 }
 0x2ae   : > { %v1687_v36 = vsel %vm837_vm2, %v780_v32, 0.0  ;;  %v783_v37 = vadd.f32 %v1293_v35, %v1679_v30  ;;  %v774_v38 = vpop.f32.mrb[19].mxu0  ;;  %v1692_v39 = vsel %vm836_vm1, %v780_v32, -1e+30 }
 0x2af   : > { %v1696_v40 = vsel %vm837_vm2, %v772_v34, 0.0  ;;  %v775_v41 = vadd.f32 %v1679_v30, %v774_v38  ;;  %858 = vmax.xlane.f32.xlu1 %v1692_v39  ;;  %v1702_v42 = vsel %vm836_vm1, %v772_v34, -1e+30 }
 0x2b0   : > { %v1706_v43 = vsel %vm837_vm2, %v783_v37, 0.0  ;;  %854 = vmax.xlane.f32.xlu0 %v1702_v42  ;;  %v1715_v45 = vsel %vm836_vm1, %v783_v37, -1e+30 }
 0x2b1   : > { %v1711_v44 = vsel %vm837_vm2, %v775_v41, 0.0  ;;  %v1720_v47 = vsel %vm836_vm1, %v775_v41, -1e+30 }
 0x2b3   : > { %860 = vmax.xlane.f32.xlu1 %v1715_v45  ;;  %v1296_v46 = vpop.f32.mrb[20].mxu0 }
 0x2b4   : > { %v796_v48 = vadd.f32 %v1296_v46, %v1679_v30  ;;  %v787_v49 = vpop.f32.mrb[21].mxu0  ;;  %856 = vmax.xlane.f32.xlu0 %v1720_v47 }
 0x2b5   : > { %v788_v50 = vadd.f32 %v1679_v30, %v787_v49  ;;  %v1297_v51 = vpop.f32.mrb[22].mxu0 }
 0x2b6   : > { %v1727_v52 = vsel %vm837_vm2, %v796_v48, 0.0  ;;  %v799_v53 = vadd.f32 %v1297_v51, %v1679_v30  ;;  %v790_v54 = vpop.f32.mrb[23].mxu0  ;;  %v1732_v55 = vsel %vm836_vm1, %v796_v48, -1e+30 }
 0x2b7   : > { %v1736_v56 = vsel %vm837_vm2, %v788_v50, 0.0  ;;  %v791_v57 = vadd.f32 %v1679_v30, %v790_v54  ;;  %v1755_v62 = vsel %vm836_vm1, %v788_v50, -1e+30 }
 0x2b8   : > { %v1741_v58 = vsel %vm837_vm2, %v799_v53, 0.0  ;;  %866 = vmax.xlane.f32.xlu0 %v1732_v55  ;;  %v1746_v59 = vsel %vm836_vm1, %v799_v53, -1e+30 }
 0x2b9   : > { %v1750_v60 = vsel %vm837_vm2, %v791_v57, 0.0  ;;  %868 = vmax.xlane.f32.xlu1 %v1746_v59  ;;  %v1761_v1 = vsel %vm836_vm1, %v791_v57, -1e+30 }
 0x2bb   : > { %v1300_v61 = vpop.f32.mrb[24].mxu0 }
 0x2bc   : > { %v812_v63 = vadd.f32 %v1300_v61, %v1679_v30  ;;  %v803_v0 = vpop.f32.mrb[25].mxu0  ;;  %862 = vmax.xlane.f32.xlu0 %v1755_v62 }
 0x2bd   : > { %v804_v2 = vadd.f32 %v1679_v30, %v803_v0  ;;  %v1301_v3 = vpop.f32.mrb[26].mxu0  ;;  %864 = vmax.xlane.f32.xlu1 %v1761_v1 }
 0x2be   : > { %v1767_v4 = vsel %vm837_vm2, %v812_v63, 0.0  ;;  %v815_v5 = vadd.f32 %v1301_v3, %v1679_v30  ;;  %v806_v6 = vpop.f32.mrb[27].mxu0  ;;  %v1772_v7 = vsel %vm836_vm1, %v812_v63, -1e+30 }
 0x2bf   : > { %v1776_v8 = vsel %vm837_vm2, %v804_v2, 0.0  ;;  %v807_v9 = vadd.f32 %v1679_v30, %v806_v6  ;;  %v1795_v14 = vsel %vm836_vm1, %v804_v2, -1e+30 }
 0x2c0   : > { %v1781_v10 = vsel %vm837_vm2, %v815_v5, 0.0  ;;  %874 = vmax.xlane.f32.xlu0 %v1772_v7  ;;  %v1786_v11 = vsel %vm836_vm1, %v815_v5, -1e+30 }
 0x2c1   : > { %v1790_v12 = vsel %vm837_vm2, %v807_v9, 0.0  ;;  %876 = vmax.xlane.f32.xlu1 %v1786_v11  ;;  %v1801_v17 = vsel %vm836_vm1, %v807_v9, -1e+30 }
 0x2c3   : > { %v1304_v13 = vpop.f32.mrb[28].mxu0 }
 0x2c4   : > { %v828_v15 = vadd.f32 %v1304_v13, %v1679_v30  ;;  %v819_v16 = vpop.f32.mrb[29].mxu0  ;;  %870 = vmax.xlane.f32.xlu0 %v1795_v14 }
 0x2c5   : > { %v820_v18 = vadd.f32 %v1679_v30, %v819_v16  ;;  %v1305_v19 = vpop.f32.mrb[30].mxu0  ;;  %872 = vmax.xlane.f32.xlu1 %v1801_v17 }
 0x2c6   : > { %v1807_v20 = vsel %vm837_vm2, %v828_v15, 0.0  ;;  %v831_v21 = vadd.f32 %v1305_v19, %v1679_v30  ;;  %v822_v22 = vpop.f32.mrb[31].mxu0 }
 0x2c7   : > { %v1812_v23 = vsel %vm837_vm2, %v820_v18, 0.0  ;;  %v823_v24 = vadd.f32 %v1679_v30, %v822_v22  ;;  %v1817_v25 = vsel %vm836_vm1, %v820_v18, -1e+30  ;;  %v1835_v30 = vsel %vm836_vm1, %v828_v15, -1e+30 }
 0x2c8   : > { %v1821_v26 = vsel %vm837_vm2, %v831_v21, 0.0  ;;  %878 = vmax.xlane.f32.xlu0 %v1817_v25  ;;  %v1840_v31 = vsel %vm836_vm1, %v831_v21, -1e+30 }
 0x2c9   : > { %v1826_v27 = vsel %vm837_vm2, %v823_v24, 0.0  ;;  %v1830_v28 = vsel %vm836_vm1, %v823_v24, -1e+30 }
 0x2ca   : > { %880 = vmax.xlane.f32.xlu1 %v1830_v28 }
 0x2cc   : > { %882 = vmax.xlane.f32.xlu0 %v1835_v30 }
 0x2ce   : > { %884 = vmax.xlane.f32.xlu1 %v1840_v31 }
 0x33c   : > { %v859_v32 = vpop.xlane.xlu1 %858 }
 0x33d   : > { %v888_v33 = vsub.f32 %v1692_v39, %v859_v32  ;;  %v855_v34 = vpop.xlane.xlu0 %854 }
 0x33e   : > { %v886_v35 = vsub.f32 %v1702_v42, %v855_v34 }
 0x33f   : > { %v906_v37 = vmul.f32 1.442695, %v888_v33 }
 0x340   : > { %v902_v38 = vmul.f32 1.442695, %v886_v35  ;;  %v861_v41 = vpop.xlane.xlu1 %860 }
 0x341   : > { %1365 = vpow2.f32 %v906_v37  ;;  %v889_v46 = vsub.f32 %v1715_v45, %v861_v41  ;;  %v857_v48 = vpop.xlane.xlu0 %856 }
 0x342   : > { %v887_v49 = vsub.f32 %v1720_v47, %v857_v48  ;;  %1367 = vpow2.f32 %v902_v38 }
 0x343   : > { %v908_v50 = vmul.f32 1.442695, %v889_v46 }
 0x344   : > { %v904_v51 = vmul.f32 1.442695, %v887_v49 }
 0x345   : > { %1369 = vpow2.f32 %v908_v50  ;;  %v867_v53 = vpop.xlane.xlu0 %866 }
 0x346   : > { %v892_v54 = vsub.f32 %v1732_v55, %v867_v53  ;;  %v869_v39 = vpop.xlane.xlu1 %868  ;;  %1371 = vpow2.f32 %v904_v51 }
 0x347   : > { %v893_v42 = vsub.f32 %v1746_v59, %v869_v39 }
 0x348   : > { %v914_v57 = vmul.f32 1.442695, %v892_v54 }
 0x349   : > { %v916_v61 = vmul.f32 1.442695, %v893_v42  ;;  %v863_v63 = vpop.xlane.xlu0 %862 }
 0x34a   : > { %1373 = vpow2.f32 %v914_v57  ;;  %v890_v45 = vsub.f32 %v1755_v62, %v863_v63  ;;  %v865_v0 = vpop.xlane.xlu1 %864 }
 0x34b   : > { %v1366_v2 = vpop.eup %1365  ;;  %1375 = vpow2.f32 %v916_v61  ;;  %v891_v47 = vsub.f32 %v1761_v1, %v865_v0 }
 0x34c   : > { %v910_v3 = vmul.f32 1.442695, %v890_v45  ;;  %v1853_v5 = vsel %vm836_vm1, %v1366_v2, 0.0  ;;  %v1368_v55 = vpop.eup %1367 }
 0x34d   : > { %v912_v6 = vmul.f32 1.442695, %v891_v47  ;;  %954 = vadd.xlane.f32.xlu0 %v1853_v5  ;;  %v875_v59 = vpop.xlane.xlu0 %874  ;;  %v1864_v18 = vsel %vm836_vm1, %v1368_v55, 0.0 }
 0x34e   : > { %1377 = vpow2.f32 %v910_v3  ;;  %v896_v9 = vsub.f32 %v1772_v7, %v875_v59  ;;  %v877_v13 = vpop.xlane.xlu1 %876 }
 0x34f   : > { %v1370_v62 = vpop.eup %1369  ;;  %1379 = vpow2.f32 %v912_v6  ;;  %v897_v15 = vsub.f32 %v1786_v11, %v877_v13 }
 0x350   : > { %v922_v16 = vmul.f32 1.442695, %v896_v9  ;;  %v1860_v1 = vsel %vm836_vm1, %v1370_v62, 0.0  ;;  %v1372_v19 = vpop.eup %1371 }
 0x351   : > { %v924_v21 = vmul.f32 1.442695, %v897_v15  ;;  %956 = vadd.xlane.f32.xlu1 %v1860_v1  ;;  %950 = vadd.xlane.f32.xlu0 %v1864_v18  ;;  %v871_v7 = vpop.xlane.xlu0 %870  ;;  %v1872_v34 = vsel %vm836_vm1, %v1372_v19, 0.0 }
 0x352   : > { %1381 = vpow2.f32 %v922_v16  ;;  %v894_v22 = vsub.f32 %v1795_v14, %v871_v7  ;;  %v873_v11 = vpop.xlane.xlu1 %872 }
 0x353   : > { %1383 = vpow2.f32 %v924_v21  ;;  %v895_v24 = vsub.f32 %v1801_v17, %v873_v11 }
 0x354   : > { %v1374_v32 = vpop.eup %1373  ;;  %v918_v33 = vmul.f32 1.442695, %v894_v22 }
 0x355   : > { %v1376_v35 = vpop.eup %1375  ;;  %v920_v37 = vmul.f32 1.442695, %v895_v24  ;;  %952 = vadd.xlane.f32.xlu1 %v1872_v34  ;;  %v879_v38 = vpop.xlane.xlu0 %878  ;;  %v1877_v41 = vsel %vm836_vm1, %v1374_v32, 0.0 }
 0x356   : > { %1385 = vpow2.f32 %v918_v33  ;;  %v898_v14 = vsub.f32 %v1817_v25, %v879_v38  ;;  %962 = vadd.xlane.f32.xlu0 %v1877_v41  ;;  %v1884_v50 = vsel %vm836_vm1, %v1376_v35, 0.0 }
 0x357   : > { %1387 = vpow2.f32 %v920_v37  ;;  %v881_v17 = vpop.xlane.xlu1 %880 }
 0x358   : > { %v1378_v46 = vpop.eup %1377  ;;  %v926_v48 = vmul.f32 1.442695, %v898_v14  ;;  %v899_v49 = vsub.f32 %v1830_v28, %v881_v17 }
 0x359   : > { %v1380_v51 = vpop.eup %1379  ;;  %964 = vadd.xlane.f32.xlu1 %v1884_v50  ;;  %v883_v53 = vpop.xlane.xlu0 %882  ;;  %v1889_v54 = vsel %vm836_vm1, %v1378_v46, 0.0 }
 0x35a   : > { %1389 = vpow2.f32 %v926_v48  ;;  %v928_v25 = vmul.f32 1.442695, %v899_v49  ;;  %v900_v39 = vsub.f32 %v1835_v30, %v883_v53  ;;  %958 = vadd.xlane.f32.xlu0 %v1889_v54  ;;  %v1896_v63 = vsel %vm836_vm1, %v1380_v51, 0.0 }
 0x35b   : > { %v885_v42 = vpop.xlane.xlu1 %884 }
 0x35c   : > { %v1382_v28 = vpop.eup %1381  ;;  %1391 = vpow2.f32 %v928_v25  ;;  %v930_v57 = vmul.f32 1.442695, %v900_v39  ;;  %v901_v61 = vsub.f32 %v1840_v31, %v885_v42 }
 0x35d   : > { %v1384_v45 = vpop.eup %1383  ;;  %960 = vadd.xlane.f32.xlu1 %v1896_v63  ;;  %v1901_v0 = vsel %vm836_vm1, %v1382_v28, 0.0 }
 0x35e   : > { %1393 = vpow2.f32 %v930_v57  ;;  %v932_v30 = vmul.f32 1.442695, %v901_v61  ;;  %970 = vadd.xlane.f32.xlu0 %v1901_v0  ;;  %v1906_v31 = vsel %vm836_vm1, %v1384_v45, 0.0 }
 0x360   : > { %v1386_v2 = vpop.eup %1385  ;;  %1395 = vpow2.f32 %v932_v30 }
 0x361   : > { %v1388_v47 = vpop.eup %1387  ;;  %972 = vadd.xlane.f32.xlu1 %v1906_v31  ;;  %v1911_v3 = vsel %vm836_vm1, %v1386_v2, 0.0 }
 0x362   : > { %966 = vadd.xlane.f32.xlu0 %v1911_v3  ;;  %v1916_v6 = vsel %vm836_vm1, %v1388_v47, 0.0 }
 0x364   : > { %v1390_v55 = vpop.eup %1389 }
 0x365   : > { %968 = vadd.xlane.f32.xlu1 %v1916_v6  ;;  %v1921_v59 = vsel %vm836_vm1, %v1390_v55, 0.0 }
 0x366   : > { %v1392_v9 = vpop.eup %1391  ;;  %974 = vadd.xlane.f32.xlu0 %v1921_v59 }
 0x367   : > { %v1926_v13 = vsel %vm836_vm1, %v1392_v9, 0.0 }
 0x368   : > { %v1394_v62 = vpop.eup %1393 }
 0x369   : > { %976 = vadd.xlane.f32.xlu1 %v1926_v13  ;;  %v1931_v15 = vsel %vm836_vm1, %v1394_v62, 0.0 }
 0x36a   : > { %v1396_v16 = vpop.eup %1395  ;;  %978 = vadd.xlane.f32.xlu0 %v1931_v15 }
 0x36b   : > { %v1936_v19 = vsel %vm836_vm1, %v1396_v16, 0.0 }
 0x36d   : > { %980 = vadd.xlane.f32.xlu1 %v1936_v19 }
 0x3da   : > { %v955_v21 = vpop.xlane.xlu0 %954 }
 0x3db   : > { %1397 = vrcp.f32 %v955_v21 }
 0x3de   : > { %v957_v7 = vpop.xlane.xlu1 %956  ;;  %v951_v22 = vpop.xlane.xlu0 %950 }
 0x3df   : > { %1399 = vrcp.f32 %v957_v7 }
 0x3e0   : > { %1401 = vrcp.f32 %v951_v22 }
 0x3e2   : > { %v953_v11 = vpop.xlane.xlu1 %952 }
 0x3e3   : > { %1403 = vrcp.f32 %v953_v11  ;;  %v963_v24 = vpop.xlane.xlu0 %962 }
 0x3e4   : > { %1405 = vrcp.f32 %v963_v24 }
 0x3e5   : > { %v1398_v32 = vpop.eup %1397 }
 0x3e6   : > { %v1000_v33 = vmul.f32 %v1398_v32, %v1853_v5  ;;  %v965_v35 = vpop.xlane.xlu1 %964 }
 0x3e7   : > { %1407 = vrcp.f32 %v965_v35  ;;  %v959_v37 = vpop.xlane.xlu0 %958 }
 0x3e8   : > { %v1032_v38 = vsel %vm836_vm1, %v1000_v33, %v1687_v36  ;;  %1409 = vrcp.f32 %v959_v37 }
 0x3e9   : > { %v1400_v14 = vpop.eup %1399  ;;  %1048 = vst [vmem:[%s1946_s20 + $0x10] sm:$0xff] %v1032_v38 }
 0x3ea   : > { %v1402_v17 = vpop.eup %1401  ;;  %v1001_v46 = vmul.f32 %v1400_v14, %v1860_v1  ;;  %v961_v48 = vpop.xlane.xlu1 %960 }
 0x3eb   : > { %v998_v5 = vmul.f32 %v1402_v17, %v1864_v18  ;;  %1411 = vrcp.f32 %v961_v48  ;;  %v971_v49 = vpop.xlane.xlu0 %970 }
 0x3ec   : > { %v1033_v36 = vsel %vm836_vm1, %v1001_v46, %v1706_v43  ;;  %1413 = vrcp.f32 %v971_v49 }
 0x3ed   : > { %v1404_v51 = vpop.eup %1403  ;;  %1049 = vst [vmem:[%s1946_s20 + $0x18] sm:$0xff] %v1033_v36  ;;  %v1030_v53 = vsel %vm836_vm1, %v998_v5, %v1696_v40 }
 0x3ee   : > { %v1406_v25 = vpop.eup %1405  ;;  %1046 = vst [vmem:[%s1946_s20] sm:$0xff] %v1030_v53  ;;  %v999_v1 = vmul.f32 %v1404_v51, %v1872_v34  ;;  %v973_v18 = vpop.xlane.xlu1 %972 }
 0x3ef   : > { %v1004_v39 = vmul.f32 %v1406_v25, %v1877_v41  ;;  %1415 = vrcp.f32 %v973_v18  ;;  %v967_v42 = vpop.xlane.xlu0 %966 }
 0x3f0   : > { %v1031_v43 = vsel %vm836_vm1, %v999_v1, %v1711_v44  ;;  %1417 = vrcp.f32 %v967_v42 }
 0x3f1   : > { %v1408_v28 = vpop.eup %1407  ;;  %1047 = vst [vmem:[%s1946_s20 + $0x8] sm:$0xff] %v1031_v43  ;;  %v1036_v40 = vsel %vm836_vm1, %v1004_v39, %v1727_v52 }
 0x3f2   : > { %v1410_v57 = vpop.eup %1409  ;;  %1052 = vst [vmem:[%s1946_s20 + $0x30] sm:$0xff] %v1036_v40  ;;  %v1005_v34 = vmul.f32 %v1408_v28, %v1884_v50  ;;  %v969_v41 = vpop.xlane.xlu1 %968 }
 0x3f3   : > { %v1002_v61 = vmul.f32 %v1410_v57, %v1889_v54  ;;  %1419 = vrcp.f32 %v969_v41  ;;  %v975_v45 = vpop.xlane.xlu0 %974 }
 0x3f4   : > { %v1037_v44 = vsel %vm836_vm1, %v1005_v34, %v1741_v58  ;;  %1421 = vrcp.f32 %v975_v45 }
 0x3f5   : > { %v1412_v30 = vpop.eup %1411  ;;  %1053 = vst [vmem:[%s1946_s20 + $0x38] sm:$0xff] %v1037_v44  ;;  %v1034_v52 = vsel %vm836_vm1, %v1002_v61, %v1736_v56 }
 0x3f6   : > { %v1414_v2 = vpop.eup %1413  ;;  %1050 = vst [vmem:[%s1946_s20 + $0x20] sm:$0xff] %v1034_v52  ;;  %v1003_v50 = vmul.f32 %v1412_v30, %v1896_v63  ;;  %v977_v54 = vpop.xlane.xlu1 %976 }
 0x3f7   : > { %v1008_v47 = vmul.f32 %v1414_v2, %v1901_v0  ;;  %1423 = vrcp.f32 %v977_v54  ;;  %v979_v55 = vpop.xlane.xlu0 %978 }
 0x3f8   : > { %v1035_v58 = vsel %vm836_vm1, %v1003_v50, %v1750_v60  ;;  %1425 = vrcp.f32 %v979_v55 }
 0x3f9   : > { %v1416_v9 = vpop.eup %1415  ;;  %1051 = vst [vmem:[%s1946_s20 + $0x28] sm:$0xff] %v1035_v58  ;;  %v1040_v56 = vsel %vm836_vm1, %v1008_v47, %v1767_v4 }
 0x3fa   : > { %v1418_v62 = vpop.eup %1417  ;;  %1056 = vst [vmem:[%s1946_s20 + $0x50] sm:$0xff] %v1040_v56  ;;  %v1009_v63 = vmul.f32 %v1416_v9, %v1906_v31  ;;  %v981_v0 = vpop.xlane.xlu1 %980 }
 0x3fb   : > { %v1006_v16 = vmul.f32 %v1418_v62, %v1911_v3  ;;  %1427 = vrcp.f32 %v981_v0 }
 0x3fc   : > { %v1041_v60 = vsel %vm836_vm1, %v1009_v63, %v1781_v10 }
 0x3fd   : > { %v1420_v21 = vpop.eup %1419  ;;  %1057 = vst [vmem:[%s1946_s20 + $0x58] sm:$0xff] %v1041_v60  ;;  %v1038_v4 = vsel %vm836_vm1, %v1006_v16, %v1776_v8 }
 0x3fe   : > { %v1422_v7 = vpop.eup %1421  ;;  %1054 = vst [vmem:[%s1946_s20 + $0x40] sm:$0xff] %v1038_v4  ;;  %v1007_v31 = vmul.f32 %v1420_v21, %v1916_v6 }
 0x3ff   : > { %v1010_v3 = vmul.f32 %v1422_v7, %v1921_v59 }
 0x400   : > { %v1039_v10 = vsel %vm836_vm1, %v1007_v31, %v1790_v12 }
 0x401   : > { %v1424_v22 = vpop.eup %1423  ;;  %1055 = vst [vmem:[%s1946_s20 + $0x48] sm:$0xff] %v1039_v10  ;;  %v1042_v11 = vsel %vm836_vm1, %v1010_v3, %v1812_v23 }
 0x402   : > { %v1426_v8 = vpop.eup %1425  ;;  %1058 = vst [vmem:[%s1946_s20 + $0x60] sm:$0xff] %v1042_v11  ;;  %v1011_v24 = vmul.f32 %v1424_v22, %v1926_v13 }
 0x403   : > { %v1012_v6 = vmul.f32 %v1426_v8, %v1931_v15 }
 0x404   : > { %v1043_v12 = vsel %vm836_vm1, %v1011_v24, %v1826_v27 }
 0x405   : > { %v1428_v59 = vpop.eup %1427  ;;  %1059 = vst [vmem:[%s1946_s20 + $0x68] sm:$0xff] %v1043_v12  ;;  %v1044_v23 = vsel %vm836_vm1, %v1012_v6, %v1807_v20 }
 0x406   : > { %1060 = vst [vmem:[%s1946_s20 + $0x70] sm:$0xff] %v1044_v23  ;;  %v1013_v32 = vmul.f32 %v1428_v59, %v1936_v19 }
 0x408   : > { %v1045_v27 = vsel %vm836_vm1, %v1013_v32, %v1821_v26 }
 0x409   : > { %1061 = vst [vmem:[%s1946_s20 + $0x78] sm:$0xff] %v1045_v27 }
 0x40a   : > { %1442 = shalt.err (!%p1439_p3)
}
 0x40b   : > { %s1443_s16 = scalar_lea.hbm %s2025_s9, 2048  ;;  %s1447_s19 = scalar_lea.hbm %s2083_s7, 4096 }
 0x40c   : > { %p1444_p4 = scmp.ne.s32.totalorder %s2025_s9, %s1443_s16  ;;  %p1448_p9 = scmp.lt.u32.totalorder %s2025_s9, %s2083_s7 }
 0x40d   : > { %p1449_p10 = scmp.lt.u32.totalorder %s1447_s19, %s1443_s16  ;;  %p1451_p12 = scmp.lt.u32.totalorder %s1443_s16, %s2025_s9 }
 0x40e   : > { %p1445_p7 = pnand %p1444_p4, %p1574_p5 }
 0x40f   : > { %p1450_p11 = por %p1449_p10, %p1448_p9 }
 0x410   : > { %p1446_p8 = pneg %p1445_p7 }
 0x411   : > { %p1452_p13 = por %p1451_p12, %p1450_p11 }
 0x413   : > { %p1453_p0 = pnand %p1452_p13, %p1446_p8 }
 0x415   : > { %1456 = shalt.err (!%p1453_p0)
}
 0x416   : > { %s1494_s23 = smov 128   ;;  %s1495_s29 = smov 8  }
 0x417   : > { %1306 = dma.vmem_to_hbm [thread:$0]  (%p1574_p5), %s2027_s22, 2048, %s2025_s9, %s2035_s28, %s1494_s23, %s1494_s23, %s1495_s29  }
 0x418 PF: > { %p1312_p1 = scmp.ge.s32.totalorder %s1491_s27, 2  ;;  %s1091_s8 = sand.u32 1, %s1479_s24  }
 0x419   : > { %s1092_s13 = scalar_lea.sflag [#allocation3], %s1091_s8 }
 0x41a   : > { %p1309_p2 = pnand %p1312_p1, %p1578_p6 }
 0x41c   : > { %1474 = dma.done.wait (!%p1309_p2), %s1092_s13, 2048  }
 0x41d   : > { %1476 = vsyncadd (!%p1309_p2), %s1092_s13, 4294965248  ;;  %p17_p3 = scmp.ge.s32.totalorder %s1561_s30, 4   ;;  %s2086_s24 = smov %s1483_s25 }
 0x41e   : > { %s2087_s25 = smov %s1487_s26  ;;  %s2088_s26 = smov %s1572_s10 }
 0x41f   : > { %s2089_s27 = smov %s1561_s30  ;;  %19 = sbr.rel (!%p17_p3) target bundleno = 3 (0x3), region = 83 }
 0x426   :  { %1097 = vsyncpa [#allocation3], 1 }
 0x427   :  { %1099 = vsyncpa [#allocation3 + $0x1], 1 }

</bundles_post_ra>
